<compile_context>
chip_gen: v5e
topology: v5e:2x2
jax: 0.10.0
libtpu: 0.0.40
codegen_flags: <defaults>
</compile_context>

<pallas_src>
import functools

import jax
import jax.numpy as jnp
from jax import lax
from jax.experimental import pallas as pl
from jax.experimental.pallas import tpu as pltpu


# ---------------------------------------------------------------------------
# Single-state kernel: pure scalar (SMEM) path, exact module semantics.
# ---------------------------------------------------------------------------
def _fhn_scalar_kernel(theta_ref, x_ref, out_ref):
    # theta_ref: SMEM (3,) f32; x_ref: SMEM (2,) f32; out_ref: SMEM (2,) f32.
    th1 = theta_ref[0]
    th2 = theta_ref[1]
    th3 = theta_ref[2]
    x0 = x_ref[0]
    x1 = x_ref[1]

    inv_th3 = 1.0 / th3                              # one scalar divide, hoisted
    dv = th3 * (x0 - x0 * x0 * x0 * (1.0 / 3.0) + x1)
    dw = -inv_th3 * (x0 - th1 + th2 * x1)

    out_ref[0] = dv
    out_ref[1] = dw


def fhn_forward(t, x, theta):
    """Pallas equivalent of FHN(theta).forward(t, x).  x: (2,), theta: (3,)."""
    del t  # unused by the FHN RHS, exactly as in the PyTorch module
    x = x.astype(jnp.float32)
    theta = theta.astype(jnp.float32)
    return pl.pallas_call(
        _fhn_scalar_kernel,
        out_shape=jax.ShapeDtypeStruct((2,), jnp.float32),
        in_specs=[
            pl.BlockSpec(memory_space=pltpu.SMEM),   # theta: 3 scalars
            pl.BlockSpec(memory_space=pltpu.SMEM),   # x:     2 scalars
        ],
        out_specs=pl.BlockSpec(memory_space=pltpu.SMEM),
    )(theta, x)


# ---------------------------------------------------------------------------
# Fused Euler integrator: whole time loop inside ONE pallas_call.
# (Removes per-RHS-eval kernel-launch overhead for the solver use case.)
# ---------------------------------------------------------------------------
def _fhn_euler_kernel(theta_ref, dt_ref, x0_ref, out_ref, *, n_steps):
    th1 = theta_ref[0]
    th2 = theta_ref[1]
    th3 = theta_ref[2]
    inv_th3 = 1.0 / th3
    dt = dt_ref[0]

    def body(i, carry):
        del i
        v, w = carry
        dv = th3 * (v - v * v * v * (1.0 / 3.0) + w)
        dw = -inv_th3 * (v - th1 + th2 * w)
        return (v + dt * dv, w + dt * dw)

    v, w = lax.fori_loop(0, n_steps, body, (x0_ref[0], x0_ref[1]))
    out_ref[0] = v
    out_ref[1] = w


def fhn_integrate_euler(x0, theta, dt, n_steps):
    """Forward-Euler integration of the FHN ODE, fused into one kernel.

    x0: (2,) initial state; returns (2,) state after `n_steps` steps of size dt.
    """
    x0 = x0.astype(jnp.float32)
    theta = theta.astype(jnp.float32)
    dt_arr = jnp.asarray([dt], dtype=jnp.float32)
    kernel = functools.partial(_fhn_euler_kernel, n_steps=int(n_steps))
    return pl.pallas_call(
        kernel,
        out_shape=jax.ShapeDtypeStruct((2,), jnp.float32),
        in_specs=[
            pl.BlockSpec(memory_space=pltpu.SMEM),   # theta
            pl.BlockSpec(memory_space=pltpu.SMEM),   # dt
            pl.BlockSpec(memory_space=pltpu.SMEM),   # x0
        ],
        out_specs=pl.BlockSpec(memory_space=pltpu.SMEM),
    )(theta, dt_arr, x0)


# ---------------------------------------------------------------------------
# Batched kernel: lane-dense (2, R, L) layout, many FHN states per launch.
# ---------------------------------------------------------------------------
def _fhn_batched_kernel(theta_ref, x_ref, out_ref):
    # theta_ref: SMEM (3,) f32; x_ref/out_ref: VMEM (2, r_tile, l_tile) f32.
    th1 = theta_ref[0]
    th2 = theta_ref[1]
    th3 = theta_ref[2]
    inv_th3 = 1.0 / th3                              # scalar unit, once per tile

    x0 = x_ref[0]                                    # (r_tile, l_tile) v-states
    x1 = x_ref[1]                                    # (r_tile, l_tile) w-states
    # Direct, unmasked, lane-dense stores -- no jnp.stack intermediate.
    out_ref[0] = th3 * (x0 - x0 * x0 * x0 * (1.0 / 3.0) + x1)
    out_ref[1] = -inv_th3 * (x0 - th1 + th2 * x1)


def _choose_block(R, L, itemsize=4, target_bytes=2 << 20):
    """Pick (r_tile, l_tile) for a (2, r_tile, l_tile) block, ~target_bytes.

    Prefers full-L blocks (fully contiguous rows -> big HBM bursts) tiled over
    the sublane axis; only tiles the lane axis when L alone blows the budget,
    in which case lane chunks are as large as the budget allows (>=8K lanes
    whenever the budget permits, so strided rows are >=32 KiB).
    4x the block (double-buffered in + out) stays under the default scoped
    VMEM limit on v5e/v6e/v7x with the 2 MiB default target.
    """
    def mult_divisors(n, m):
        return [d for d in range(m, n + 1, m) if n % d == 0]

    if 2 * 8 * L * itemsize <= target_bytes:
        cands = [d for d in mult_divisors(R, 8)
                 if 2 * d * L * itemsize <= target_bytes]
        r_tile = max(cands) if cands else 8
        l_tile = L
    else:
        r_tile = 8
        cands = [d for d in mult_divisors(L, 128)
                 if 2 * 8 * d * itemsize <= target_bytes]
        l_tile = max(cands) if cands else 128

    # v7x megacore: keep >=2 grid steps along the parallel axis once the
    # problem is big enough that the split isn't pure overhead.
    total_bytes = 2 * R * L * itemsize
    if ((R // r_tile) * (L // l_tile) == 1
            and total_bytes >= (1 << 20) and R // 8 >= 2):
        half = r_tile // 2
        while half >= 8 and (R % half != 0 or half % 8 != 0):
            half -= 8
        if half >= 8:
            r_tile = half
    return r_tile, l_tile


def fhn_forward_batched(t, x_states, theta):
    """Vectorized FHN RHS for R*L independent states.

    x_states: (2, R, L) float32; plane 0 holds v, plane 1 holds w.
    Returns (2, R, L) float32: plane 0 = dv, plane 1 = dw.
    """
    del t
    x_states = x_states.astype(jnp.float32)
    theta = theta.astype(jnp.float32)
    _, R, L = x_states.shape
    assert R % 8 == 0 and L % 128 == 0, (R, L)

    r_tile, l_tile = _choose_block(R, L)
    grid = (R // r_tile, L // l_tile)

    return pl.pallas_call(
        _fhn_batched_kernel,
        out_shape=jax.ShapeDtypeStruct((2, R, L), jnp.float32),
        grid=grid,
        in_specs=[
            pl.BlockSpec(memory_space=pltpu.SMEM),                      # theta
            pl.BlockSpec((2, r_tile, l_tile), lambda i, j: (0, i, j)),  # state
        ],
        out_specs=pl.BlockSpec((2, r_tile, l_tile), lambda i, j: (0, i, j)),
        compiler_params=pltpu.CompilerParams(
            dimension_semantics=("parallel", "parallel")),
    )(theta, x_states)


# ---------------------------------------------------------------------------
# Pure-JAX references.
# ---------------------------------------------------------------------------
def _fhn_ref(x0, x1, theta):
    th1, th2, th3 = theta[0], theta[1], theta[2]
    dv = th3 * (x0 - x0 ** 3 / 3.0 + x1)
    dw = -1.0 / th3 * (x0 - th1 + th2 * x1)
    return dv, dw


def _euler_ref(x, theta, dt, n_steps):
    v, w = x[0], x[1]
    for _ in range(n_steps):
        dv, dw = _fhn_ref(v, w, theta)
        v, w = v + dt * dv, w + dt * dw
    return jnp.stack([v, w])


if __name__ == "__main__":
    key = jax.random.PRNGKey(0)
    k1, k2 = jax.random.split(key)
    theta = jnp.array([0.2, 0.2, 3.0], dtype=jnp.float32)
    t = jnp.float32(0.0)

    # --- single-state path: exact FHN.forward semantics --------------------
    x = jax.random.normal(k1, (2,), dtype=jnp.float32)
    out = jax.block_until_ready(fhn_forward(t, x, theta))
    dv_r, dw_r = _fhn_ref(x[0], x[1], theta)
    ref = jnp.stack([dv_r, dw_r])
    assert out.shape == (2,) and out.dtype == jnp.float32
    assert jnp.allclose(out, ref, rtol=1e-5, atol=1e-6), (out, ref)

    # --- fused time-integration loop (one pallas_call, no per-step launch) -
    n_steps, dt = 20, 0.05
    out_int = jax.block_until_ready(fhn_integrate_euler(x, theta, dt, n_steps))
    ref_int = _euler_ref(x, theta, dt, n_steps)
    assert out_int.shape == (2,) and out_int.dtype == jnp.float32
    assert jnp.allclose(out_int, ref_int, rtol=1e-5, atol=1e-5), (out_int, ref_int)

    # --- batched lane-dense path: block auto-sized, >=2 parallel grid steps -
    R, L = 64, 2048
    xb = jax.random.normal(k2, (2, R, L), dtype=jnp.float32)
    outb = jax.block_until_ready(fhn_forward_batched(t, xb, theta))
    dvb, dwb = _fhn_ref(xb[0], xb[1], theta)
    refb = jnp.stack([dvb, dwb], axis=0)
    assert outb.shape == (2, R, L) and outb.dtype == jnp.float32
    assert jnp.allclose(outb, refb, rtol=1e-5, atol=1e-6)

    print("KERNEL_OK")
</pallas_src>

<mosaic_0001>
module attributes {stable_mosaic.version = 11 : i64} {
  func.func @_fhn_scalar_kernel(%arg0: memref<3xf32, #tpu.memory_space<smem>>, %arg1: memref<2xf32, #tpu.memory_space<smem>>, %arg2: memref<2xf32, #tpu.memory_space<smem>>) attributes {dimension_semantics = [], scalar_prefetch = 0 : i64, scratch_operands = 0 : i64, tpu.core_type = #tpu.core_type<tc>} {
    %c0 = arith.constant 0 : index
    %0 = memref.load %arg0[%c0] : memref<3xf32, #tpu.memory_space<smem>>
    %c1 = arith.constant 1 : index
    %1 = memref.load %arg0[%c1] : memref<3xf32, #tpu.memory_space<smem>>
    %c2 = arith.constant 2 : index
    %2 = memref.load %arg0[%c2] : memref<3xf32, #tpu.memory_space<smem>>
    %c0_0 = arith.constant 0 : index
    %3 = memref.load %arg1[%c0_0] : memref<2xf32, #tpu.memory_space<smem>>
    %c1_1 = arith.constant 1 : index
    %4 = memref.load %arg1[%c1_1] : memref<2xf32, #tpu.memory_space<smem>>
    %cst = arith.constant 1.000000e+00 : f32
    %5 = arith.divf %cst, %2 : f32
    %6 = arith.mulf %3, %3 : f32
    %7 = arith.mulf %6, %3 : f32
    %cst_2 = arith.constant 0.333333343 : f32
    %8 = arith.mulf %7, %cst_2 : f32
    %9 = arith.subf %3, %8 : f32
    %10 = arith.addf %9, %4 : f32
    %11 = arith.mulf %2, %10 : f32
    %cst_3 = arith.constant 0.000000e+00 : f32
    %12 = arith.subf %cst_3, %5 : f32
    %13 = arith.subf %3, %0 : f32
    %14 = arith.mulf %1, %4 : f32
    %15 = arith.addf %13, %14 : f32
    %16 = arith.mulf %12, %15 : f32
    %c0_4 = arith.constant 0 : index
    %17 = memref.load %arg2[%c0_4] : memref<2xf32, #tpu.memory_space<smem>>
    memref.store %11, %arg2[%c0_4] : memref<2xf32, #tpu.memory_space<smem>>
    %c1_5 = arith.constant 1 : index
    %18 = memref.load %arg2[%c1_5] : memref<2xf32, #tpu.memory_space<smem>>
    memref.store %16, %arg2[%c1_5] : memref<2xf32, #tpu.memory_space<smem>>
    return
  }
}

</mosaic_0001>

<bundles_post_ra>
// kernel: tpu_custom_call.1
= control target key start
LH: loop header
LB: loop body
LE: loop exit
PB: predicated region body
PF: predicated region fallthrough
CT: control target
= control target key end

     0   :  { %7 = vsyncpa [#allocation3], 0  ;;  %s176_s0 = inlined_call_operand.hbm [shape: f32[3], index: 0, kind: input, shape index: {}]   ;;  %s177_s1 = inlined_call_operand.hbm [shape: f32[2], index: 1, kind: input, shape index: {}]   ;;  %s178_s2 = inlined_call_operand.hbm [shape: f32[2], index: 2, kind: output, shape index: {}]  }
   0x1   :  { %8 = vsyncpa [#allocation6], 0 }
   0x2   :  { %9 = vsyncpa [#allocation4], 0  ;;  %s15_s11 = sshll.u32 %s176_s0, 4  ;;  %s24_s14 = sshll.u32 %s177_s1, 4  ;;  %s16_s11 = int_to_ptr.hbm [resolvable:$true] %s15_s11  ;;  %s25_s14 = int_to_ptr.hbm [resolvable:$true] %s24_s14 }
   0x3   :  { %s142_s15 = smov [#allocation2]   ;;  %s143_s16 = smov [#allocation5]  }
   0x4   :  { %18 = dma.hbm_to_smem %s16_s11, 16, %s142_s15, [#allocation3]  }
   0x5   :  { %27 = dma.hbm_to_smem %s25_s14, 16, %s143_s16, [#allocation6]  }
   0x6   :  { %136 = dma.done.wait [#allocation3], 16  }
   0x7   :  { %137 = vsyncadd [#allocation3], 4294967280 }
   0x8   :  { %138 = dma.done.wait [#allocation6], 16  }
   0x9   :  { %139 = vsyncadd [#allocation6], 4294967280 }
   0xa   :  { %36 = sfence }
   0xb   :  { %s91_s17 = sld [smem:[#allocation2 + $0x2]]  ;;  %s78_s3 = sshll.u32 %s178_s2, 4  ;;  %s79_s3 = int_to_ptr.hbm [resolvable:$true] %s78_s3 }
   0xc   :  { %s166_s18 = sld [smem:[#allocation5]]  ;;  %s144_s7 = smov [#allocation7]  }
   0xd   :  { %s92_s1 = sld [smem:[#allocation5 + $0x1]] }
   0xe   :  { %s37_s24 = sld [smem:[#allocation2]] }
   0xf   :  { %s90_s25 = sld [smem:[#allocation2 + $0x1]] }
  0x11   :  { %v42_v0 = vstv %s91_s17 }
  0x12   :  { %98 = vrcp.f32 %v42_v0  ;;  %s58_s0 = smul.f32 %s166_s18, %s166_s18  ;;  %v54_v3 = vand.u32 2147483648, %v42_v0  ;;  %vm48_vm0 = vweird.f32 %v42_v0  ;;  %v52_v5 = vand.u32 2147483647, %v42_v0 }
  0x14   :  { %s59_s19 = smul.f32 %s58_s0, %s166_s18  ;;  %v55_v7 = vor.u32 1.1754944e-38, %v54_v3  ;;  %vm53_vm3 = vcmp.eq.f32.partialorder %v52_v5, 8.507059e+37  ;;  %s65_s26 = ssub.f32 %s166_s18, %s37_s24 }
  0x15   :  { %s66_s27 = smul.f32 %s92_s1, %s90_s25 }
  0x16   :  { %s60_s20 = smul.f32 0.33333334, %s59_s19 }
  0x17   :  { %s67_s28 = sadd.f32 %s66_s27, %s65_s26 }
  0x18   :  { %v99_v1 = vpop.eup %98  ;;  %s61_s21 = ssub.f32 %s166_s18, %s60_s20 }
  0x19   :  { %v44_v2 = vmul.f32 %v99_v1, %v42_v0  ;;  %vm49_vm1 = vweird.f32 %v99_v1 }
  0x1a   :  { %s62_s22 = sadd.f32 %s92_s1, %s61_s21  ;;  %vm50_vm2 = vmor %vm48_vm0, %vm49_vm1 }
  0x1b   :  { %v45_v4 = vsub.f32 1.0, %v44_v2 }
  0x1c   :  { %s63_s23 = smul.f32 %s91_s17, %s62_s22 }
  0x1d   :  { %v46_v6 = vmul.f32 %v99_v1, %v45_v4 }
  0x1e   :  { %70 = sst [smem:[#allocation7]] %s63_s23 }
  0x1f   :  { %v47_v8 = vadd.f32 %v99_v1, %v46_v6 }
  0x21   :  { %v51_v9 = vsel %vm50_vm2, %v99_v1, %v47_v8 }
  0x22   :  { %v56_v10 = vsel %vm53_vm3, %v55_v7, %v51_v9 }
  0x23   :  { %93 = vpush %v56_v10 }
  0x54   :  { %s94_s4 = spop %93 }
  0x55   :  { %s64_s5 = ssub.f32 0.0, %s94_s4 }
  0x57   :  { %s68_s6 = smul.f32 %s67_s28, %s64_s5 }
  0x59   :  { %72 = sst [smem:[#allocation7 + $0x1]] %s68_s6 }
  0x5a   :  { %81 = dma.smem_to_hbm %s144_s7, 16, %s79_s3, [#allocation4]  }
  0x5b   :  { %140 = dma.done.wait [#allocation4], 16  }
  0x5c   :  { %141 = vsyncadd [#allocation4], 4294967280 }
  0x5d   :  { %86 = sfence }
  0x5e   :  { %87 = vsyncpa [#allocation3], 1 }
  0x5f   :  { %88 = vsyncpa [#allocation6], 1 }
  0x60   :  { %89 = vsyncpa [#allocation4], 1 }

</bundles_post_ra>
